<compile_context>
chip_gen: v6e
topology: v6e:2x2x1
jax: 0.10.0
libtpu: 0.0.40
codegen_flags: <defaults>
</compile_context>

<pallas_src>
import jax
import jax.numpy as jnp
from jax.experimental import pallas as pl
from jax.experimental.pallas import tpu as pltpu

EPS = 1e-5               # nn.BatchNorm2d default eps
LANE = 128               # TPU lane width
VMEM_BUDGET = 24 * 1024 * 1024   # working-set budget used to pick tk
VMEM_LIMIT = 32 * 1024 * 1024    # compiler scoped-VMEM limit
USE_BF16_MATMUL = False  # True on v6e/v7x: bf16 MXU inputs (f32 accumulation)
                         # for ~2x matmul throughput; False keeps f32 reference
                         # semantics exactly.


def _round_up(x, m):
    return (x + m - 1) // m * m


def _cdiv(a, b):
    return (a + b - 1) // b


def _pick_row_tile(rows, cap=512):
    """Row tile: multiple of 8, <= cap, minimal padding waste."""
    n = max(1, _cdiv(rows, cap))
    t = _round_up(_cdiv(rows, n), 8)
    return t, _round_up(rows, t)


# ---------------------------------------------------------------------------
# Pallas kernels
# ---------------------------------------------------------------------------
def maxpool_kernel(x_ref, o_ref):
    # x_ref: (4, tr, L) -- the 4 candidates of each 2x2 window stacked on a
    #                      leading axis, lane-dense last dim (OW*C)
    # o_ref: (tr, L)
    x = x_ref[...]
    o_ref[...] = jnp.maximum(jnp.maximum(x[0], x[1]), jnp.maximum(x[2], x[3]))


def conv_matmul_stats_kernel(cols_ref, w_ref, y_ref, stat_ref, acc_ref):
    # cols_ref: (tm, tk) im2col tile      w_ref:    (tk, Cp) weight tile
    # y_ref:    (tm, Cp) conv output      stat_ref: (1, 8, Cp) per-tile stats
    # acc_ref:  (tm, Cp) f32 scratch accumulator (resident across the K axis)
    k = pl.program_id(1)

    @pl.when(k == 0)
    def _():
        acc_ref[...] = jnp.zeros_like(acc_ref)

    acc_ref[...] += jnp.dot(cols_ref[...], w_ref[...],
                            preferred_element_type=jnp.float32)   # MXU

    @pl.when(k == pl.num_programs(1) - 1)
    def _():
        acc = acc_ref[...]
        y_ref[...] = acc.astype(y_ref.dtype)
        # Per-tile partial BatchNorm statistics; row 0 = sum, row 1 = sum_sq.
        # Cross-tile reduction happens in the wrapper (f32 accumulation).
        s = jnp.sum(acc, axis=0, keepdims=True)
        sq = jnp.sum(acc * acc, axis=0, keepdims=True)
        pad = jnp.zeros((6, acc.shape[1]), jnp.float32)
        stat_ref[...] = jnp.concatenate([s, sq, pad], axis=0)[None]


def bn_relu_kernel(y_ref, scale_ref, shift_ref, o_ref):
    # Folded BatchNorm affine (1 FMA / element) + ReLU.
    # y_ref: (tm, Cp)   scale_ref/shift_ref: (1, Cp)   o_ref: (tm, Cp)
    o_ref[...] = jnp.maximum(
        y_ref[...] * scale_ref[...] + shift_ref[...], 0.0).astype(o_ref.dtype)


# ---------------------------------------------------------------------------
# Wrappers (glue: layout plumbing, padding, im2col)
# ---------------------------------------------------------------------------
def maxpool2x2(x_nhwc):
    N, H, W, C = x_nhwc.shape
    OH, OW = H // 2, W // 2
    R, L = N * OH, OW * C
    # (N,H,W,C) -> (dy, dx, N*OH, OW*C): 4 window candidates on a leading
    # axis, lane-dense last dim (glue reshape/transpose in XLA).
    xr = (x_nhwc.reshape(N, OH, 2, OW, 2, C)
                .transpose(2, 4, 0, 1, 3, 5)
                .reshape(4, R, L))
    tr, Rp = _pick_row_tile(R, 512)
    if Rp != R:
        xr = jnp.pad(xr, ((0, 0), (0, Rp - R), (0, 0)))
    pooled = pl.pallas_call(
        maxpool_kernel,
        out_shape=jax.ShapeDtypeStruct((Rp, L), x_nhwc.dtype),
        grid=(Rp // tr,),
        in_specs=[pl.BlockSpec((4, tr, L), lambda i: (0, i, 0))],
        out_specs=pl.BlockSpec((tr, L), lambda i: (i, 0)),
        compiler_params=pltpu.CompilerParams(
            dimension_semantics=("parallel",),
            vmem_limit_bytes=VMEM_LIMIT),
    )(xr)
    return pooled[:R].reshape(N, OH, OW, C)


def _pick_k_tile(Kp0, tm, Cp):
    """Largest K tile (multiple of 128) whose double-buffered working set fits
    the VMEM budget; avoids padding K when it fits in one tile."""
    tk_cap = 2048
    while tk_cap > 256:
        # 2x cols tile + 2x weight tile + acc + 2x y tile (f32 bytes)
        ws = 4 * (2 * (tm * tk_cap + tk_cap * Cp) + 3 * tm * Cp)
        if ws <= VMEM_BUDGET:
            break
        tk_cap //= 2
    if Kp0 <= tk_cap:
        return Kp0, Kp0
    return tk_cap, _round_up(Kp0, tk_cap)


def conv_bn_relu(x_nhwc, w, gamma, beta):
    """3x3 conv (pad=1, bias-free) + BatchNorm2d (training-mode batch stats,
    biased variance) + ReLU.  w layout: (3, 3, Cin, Cout)."""
    N, H, W, Cin = x_nhwc.shape
    Cout = w.shape[-1]
    M, K = N * H * W, 9 * Cin

    # im2col patches (glue).
    # TODO(synk): replace the materialized 9x im2col with in-kernel shifted-tap
    # accumulation (halo DMA) to cut HBM activation traffic ~9x.
    xp = jnp.pad(x_nhwc, ((0, 0), (1, 1), (1, 1), (0, 0)))
    cols = jnp.concatenate(
        [xp[:, dy:dy + H, dx:dx + W, :] for dy in range(3) for dx in range(3)],
        axis=-1).reshape(M, K)
    wmat = w.reshape(K, Cout)

    # Lane-dense / tile-aligned padding (zeros contribute nothing).
    Cp = _round_up(Cout, LANE)
    tm, Mp = _pick_row_tile(M, 512)
    n_mt = Mp // tm
    Kp0 = _round_up(K, LANE)
    tk, Kp = _pick_k_tile(Kp0, tm, Cp)

    mm_dtype = jnp.bfloat16 if USE_BF16_MATMUL else x_nhwc.dtype
    cols_p = jnp.pad(cols.astype(mm_dtype), ((0, Mp - M), (0, Kp - K)))
    w_p = jnp.pad(wmat.astype(mm_dtype), ((0, Kp - K), (0, Cp - Cout)))

    itemsize = jnp.dtype(mm_dtype).itemsize
    cost = pl.CostEstimate(
        flops=int(2 * Mp * Kp * Cp),
        transcendentals=0,
        bytes_accessed=int((cols_p.size + w_p.size) * itemsize
                           + (Mp * Cp + n_mt * 8 * Cp) * 4))

    y, stats = pl.pallas_call(
        conv_matmul_stats_kernel,
        out_shape=(jax.ShapeDtypeStruct((Mp, Cp), jnp.float32),
                   jax.ShapeDtypeStruct((n_mt, 8, Cp), jnp.float32)),
        grid=(n_mt, Kp // tk),
        in_specs=[pl.BlockSpec((tm, tk), lambda i, k: (i, k)),
                  pl.BlockSpec((tk, Cp), lambda i, k: (k, 0))],
        out_specs=(pl.BlockSpec((tm, Cp), lambda i, k: (i, 0)),
                   pl.BlockSpec((1, 8, Cp), lambda i, k: (i, 0, 0))),
        scratch_shapes=[pltpu.VMEM((tm, Cp), jnp.float32)],
        compiler_params=pltpu.CompilerParams(
            dimension_semantics=("parallel", "arbitrary"),
            vmem_limit_bytes=VMEM_LIMIT),
        cost_estimate=cost,
    )(cols_p, w_p)

    # Cross-tile BatchNorm statistics.  Padded rows / channels contribute
    # exact zeros (no conv bias), so dividing by the true M is correct.
    ssum = jnp.sum(stats[:, 0, :Cout], axis=0)
    ssq = jnp.sum(stats[:, 1, :Cout], axis=0)
    mean = ssum / M
    var = jnp.maximum(ssq / M - mean * mean, 0.0)       # biased variance (f32)
    scale = gamma * jax.lax.rsqrt(var + EPS)
    shift = beta - mean * scale
    scale_p = jnp.pad(scale, (0, Cp - Cout)).reshape(1, Cp).astype(jnp.float32)
    shift_p = jnp.pad(shift, (0, Cp - Cout)).reshape(1, Cp).astype(jnp.float32)

    out = pl.pallas_call(
        bn_relu_kernel,
        out_shape=jax.ShapeDtypeStruct((Mp, Cp), x_nhwc.dtype),
        grid=(n_mt,),
        in_specs=[pl.BlockSpec((tm, Cp), lambda i: (i, 0)),
                  pl.BlockSpec((1, Cp), lambda i: (0, 0)),
                  pl.BlockSpec((1, Cp), lambda i: (0, 0))],
        out_specs=pl.BlockSpec((tm, Cp), lambda i: (i, 0)),
        compiler_params=pltpu.CompilerParams(
            dimension_semantics=("parallel",),
            vmem_limit_bytes=VMEM_LIMIT),
    )(y, scale_p, shift_p)
    return out[:M, :Cout].reshape(N, H, W, Cout)


def down_forward(x_nchw, params):
    """Down.forward: maxpool(2) -> (conv3x3 + BN + ReLU) x 2.  NCHW in/out."""
    x = jnp.transpose(x_nchw, (0, 2, 3, 1))          # NCHW -> NHWC
    h = maxpool2x2(x)
    h = conv_bn_relu(h, params["w1"], params["g1"], params["be1"])
    h = conv_bn_relu(h, params["w2"], params["g2"], params["be2"])
    return jnp.transpose(h, (0, 3, 1, 2))            # NHWC -> NCHW


# ---------------------------------------------------------------------------
# Pure-JAX reference (correctness oracle)
# ---------------------------------------------------------------------------
def down_ref(x_nchw, params):
    x = jnp.transpose(x_nchw, (0, 2, 3, 1))
    x = jax.lax.reduce_window(x, -jnp.inf, jax.lax.max,
                              (1, 2, 2, 1), (1, 2, 2, 1), "VALID")
    for wk, gk, bk in (("w1", "g1", "be1"), ("w2", "g2", "be2")):
        y = jax.lax.conv_general_dilated(
            x, params[wk], (1, 1), "SAME",
            dimension_numbers=("NHWC", "HWIO", "NHWC"))
        mean = y.mean(axis=(0, 1, 2))
        var = y.var(axis=(0, 1, 2))
        y = (y - mean) * jax.lax.rsqrt(var + EPS) * params[gk] + params[bk]
        x = jnp.maximum(y, 0.0)
    return jnp.transpose(x, (0, 3, 1, 2))


# ---------------------------------------------------------------------------
# Deterministic parameter init (shapes from Down(in_channels, out_channels)).
# Conv biases are omitted: they are exactly cancelled by the following BN.
# ---------------------------------------------------------------------------
def init_params(in_channels, out_channels, key):
    mid = out_channels
    k1, k2 = jax.random.split(key, 2)
    s1 = 1.0 / jnp.sqrt(9.0 * in_channels)
    s2 = 1.0 / jnp.sqrt(9.0 * mid)
    return {
        "w1": jax.random.normal(k1, (3, 3, in_channels, mid), jnp.float32) * s1,
        "g1": jnp.ones((mid,), jnp.float32),
        "be1": jnp.zeros((mid,), jnp.float32),
        "w2": jax.random.normal(k2, (3, 3, mid, out_channels), jnp.float32) * s2,
        "g2": jnp.ones((out_channels,), jnp.float32),
        "be2": jnp.zeros((out_channels,), jnp.float32),
    }


if __name__ == "__main__":
    key = jax.random.PRNGKey(0)
    kx, kp = jax.random.split(key)
    # Down(in_channels=4, out_channels=8), input (N=2, C=4, H=16, W=16) NCHW
    x = jax.random.normal(kx, (2, 4, 16, 16), jnp.float32)
    params = init_params(4, 8, kp)

    out = jax.jit(down_forward)(x, params)
    out = jax.block_until_ready(out)
    assert out.shape == (2, 8, 8, 8), out.shape
    assert out.dtype == jnp.float32

    ref = jax.block_until_ready(down_ref(x, params))
    assert bool(jnp.allclose(out, ref, rtol=1e-2, atol=1e-2)), "mismatch vs ref"
    print("KERNEL_OK")
</pallas_src>

<mosaic_0001>
module attributes {stable_mosaic.version = 11 : i64} {
  func.func @maxpool_kernel(%arg0: i32, %arg1: memref<4x16x32xf32, #tpu.memory_space<vmem>>, %arg2: memref<16x32xf32, #tpu.memory_space<vmem>>) attributes {dimension_semantics = [#tpu.dimension_semantics<parallel>], iteration_bounds = array<i64: 1>, scalar_prefetch = 0 : i64, scratch_operands = 0 : i64, tpu.core_type = #tpu.core_type<tc>, window_params = [{transform_indices = @transform_0, window_bounds = array<i64: 4, 16, 32>}, {transform_indices = @transform_1, window_bounds = array<i64: 16, 32>}]} {
    %c0 = arith.constant 0 : index
    %c0_0 = arith.constant 0 : index
    %c0_1 = arith.constant 0 : index
    %0 = vector.load %arg1[%c0, %c0_0, %c0_1] : memref<4x16x32xf32, #tpu.memory_space<vmem>>, vector<4x16x32xf32>
    %1 = vector.extract_strided_slice %0 {offsets = [0, 0, 0], sizes = [1, 16, 32], strides = [1, 1, 1]} : vector<4x16x32xf32> to vector<1x16x32xf32>
    %2 = vector.shape_cast %1 : vector<1x16x32xf32> to vector<16x32xf32>
    %3 = vector.extract_strided_slice %0 {offsets = [1, 0, 0], sizes = [1, 16, 32], strides = [1, 1, 1]} : vector<4x16x32xf32> to vector<1x16x32xf32>
    %4 = vector.shape_cast %3 : vector<1x16x32xf32> to vector<16x32xf32>
    %5 = arith.maximumf %2, %4 : vector<16x32xf32>
    %6 = vector.extract_strided_slice %0 {offsets = [2, 0, 0], sizes = [1, 16, 32], strides = [1, 1, 1]} : vector<4x16x32xf32> to vector<1x16x32xf32>
    %7 = vector.shape_cast %6 : vector<1x16x32xf32> to vector<16x32xf32>
    %8 = vector.extract_strided_slice %0 {offsets = [3, 0, 0], sizes = [1, 16, 32], strides = [1, 1, 1]} : vector<4x16x32xf32> to vector<1x16x32xf32>
    %9 = vector.shape_cast %8 : vector<1x16x32xf32> to vector<16x32xf32>
    %10 = arith.maximumf %7, %9 : vector<16x32xf32>
    %11 = arith.maximumf %5, %10 : vector<16x32xf32>
    %c0_2 = arith.constant 0 : index
    %c0_3 = arith.constant 0 : index
    %12 = vector.load %arg2[%c0_2, %c0_3] : memref<16x32xf32, #tpu.memory_space<vmem>>, vector<16x32xf32>
    tpu.vector_store %arg2[%c0_2, %c0_3], %11 {strides = array<i32>} : memref<16x32xf32, #tpu.memory_space<vmem>>, vector<16x32xf32>,
    return
  }
  func.func @transform_0(%arg0: i32) -> (i32, i32, i32) {
    %c0_i32 = arith.constant 0 : i32
    %c0_i32_0 = arith.constant 0 : i32
    %c0_i32_1 = arith.constant 0 : i32
    return %c0_i32, %arg0, %c0_i32_0 : i32, i32, i32
  }
  func.func @transform_1(%arg0: i32) -> (i32, i32) {
    %c0_i32 = arith.constant 0 : i32
    %c0_i32_0 = arith.constant 0 : i32
    return %arg0, %c0_i32 : i32, i32
  }
}

module attributes {stable_mosaic.version = 11 : i64} {
  func.func @conv_matmul_stats_kernel(%arg0: i32, %arg1: i32, %arg2: memref<128x128xf32, #tpu.memory_space<vmem>>, %arg3: memref<128x128xf32, #tpu.memory_space<vmem>>, %arg4: memref<128x128xf32, #tpu.memory_space<vmem>>, %arg5: memref<1x8x128xf32, #tpu.memory_space<vmem>>, %arg6: memref<128x128xf32, #tpu.memory_space<vmem>>) attributes {dimension_semantics = [#tpu.dimension_semantics<parallel>, #tpu.dimension_semantics<arbitrary>], iteration_bounds = array<i64: 1, 1>, scalar_prefetch = 0 : i64, scratch_operands = 1 : i64, tpu.core_type = #tpu.core_type<tc>, window_params = [{transform_indices = @transform_0, window_bounds = array<i64: 128, 128>}, {transform_indices = @transform_1, window_bounds = array<i64: 128, 128>}, {transform_indices = @transform_2, window_bounds = array<i64: 128, 128>}, {transform_indices = @transform_3, window_bounds = array<i64: 1, 8, 128>}]} {
    %c0_i32 = arith.constant 0 : i32
    %0 = arith.cmpi eq, %arg1, %c0_i32 : i32
    %1 = arith.extui %0 : i1 to i32
    %c0_i32_0 = arith.constant 0 : i32
    %2 = arith.cmpi ne, %1, %c0_i32_0 : i32
    scf.if %2 {
      %cst_10 = arith.constant 0.000000e+00 : f32
      %12 = vector.broadcast %cst_10 : f32 to vector<128x128xf32>
      %c0_11 = arith.constant 0 : index
      %c0_12 = arith.constant 0 : index
      %13 = vector.load %arg6[%c0_11, %c0_12] : memref<128x128xf32, #tpu.memory_space<vmem>>, vector<128x128xf32>
      tpu.vector_store %arg6[%c0_11, %c0_12], %12 {strides = array<i32>} : memref<128x128xf32, #tpu.memory_space<vmem>>, vector<128x128xf32>,
    } else {
    }
    %c0 = arith.constant 0 : index
    %c0_1 = arith.constant 0 : index
    %3 = vector.load %arg6[%c0, %c0_1] : memref<128x128xf32, #tpu.memory_space<vmem>>, vector<128x128xf32>
    %c0_2 = arith.constant 0 : index
    %c0_3 = arith.constant 0 : index
    %4 = vector.load %arg2[%c0_2, %c0_3] : memref<128x128xf32, #tpu.memory_space<vmem>>, vector<128x128xf32>
    %c0_4 = arith.constant 0 : index
    %c0_5 = arith.constant 0 : index
    %5 = vector.load %arg3[%c0_4, %c0_5] : memref<128x128xf32, #tpu.memory_space<vmem>>, vector<128x128xf32>
    %cst = arith.constant dense<0.000000e+00> : vector<128x128xf32>
    %6 = tpu.matmul %4, %5, %cst {dimension_numbers = #tpu.dot_dimension_numbers<[1], [0], [0], [1], [0, 0, 1, 1], [], []>} : vector<128x128xf32>, vector<128x128xf32>, vector<128x128xf32> -> vector<128x128xf32>
    %7 = arith.addf %3, %6 : vector<128x128xf32>
    %c0_6 = arith.constant 0 : index
    %c0_7 = arith.constant 0 : index
    %8 = vector.load %arg6[%c0_6, %c0_7] : memref<128x128xf32, #tpu.memory_space<vmem>>, vector<128x128xf32>
    tpu.vector_store %arg6[%c0_6, %c0_7], %7 {strides = array<i32>} : memref<128x128xf32, #tpu.memory_space<vmem>>, vector<128x128xf32>,
    %c0_i32_8 = arith.constant 0 : i32
    %9 = arith.cmpi eq, %arg1, %c0_i32_8 : i32
    %10 = arith.extui %9 : i1 to i32
    %c0_i32_9 = arith.constant 0 : i32
    %11 = arith.cmpi ne, %10, %c0_i32_9 : i32
    scf.if %11 {
      %c0_10 = arith.constant 0 : index
      %c0_11 = arith.constant 0 : index
      %12 = vector.load %arg6[%c0_10, %c0_11] : memref<128x128xf32, #tpu.memory_space<vmem>>, vector<128x128xf32>
      %c0_12 = arith.constant 0 : index
      %c0_13 = arith.constant 0 : index
      %13 = vector.load %arg4[%c0_12, %c0_13] : memref<128x128xf32, #tpu.memory_space<vmem>>, vector<128x128xf32>
      tpu.vector_store %arg4[%c0_12, %c0_13], %12 {strides = array<i32>} : memref<128x128xf32, #tpu.memory_space<vmem>>, vector<128x128xf32>,
      %cst_14 = arith.constant dense<0.000000e+00> : vector<128xf32>
      %14 = vector.multi_reduction <add>, %12, %cst_14 [0] : vector<128x128xf32> to vector<128xf32>
      %15 = vector.shape_cast %14 : vector<128xf32> to vector<1x128xf32>
      %16 = arith.mulf %12, %12 : vector<128x128xf32>
      %cst_15 = arith.constant dense<0.000000e+00> : vector<128xf32>
      %17 = vector.multi_reduction <add>, %16, %cst_15 [0] : vector<128x128xf32> to vector<128xf32>
      %18 = vector.shape_cast %17 : vector<128xf32> to vector<1x128xf32>
      %cst_16 = arith.constant 0.000000e+00 : f32
      %19 = vector.broadcast %cst_16 : f32 to vector<6x128xf32>
      %20 = tpu.concatenate %15, %18, %19 in 0 : vector<1x128xf32>, vector<1x128xf32>, vector<6x128xf32> -> vector<8x128xf32>
      %21 = vector.shape_cast %20 : vector<8x128xf32> to vector<1x8x128xf32>
      %c0_17 = arith.constant 0 : index
      %c0_18 = arith.constant 0 : index
      %c0_19 = arith.constant 0 : index
      %22 = vector.load %arg5[%c0_17, %c0_18, %c0_19] : memref<1x8x128xf32, #tpu.memory_space<vmem>>, vector<1x8x128xf32>
      tpu.vector_store %arg5[%c0_17, %c0_18, %c0_19], %21 {strides = array<i32>} : memref<1x8x128xf32, #tpu.memory_space<vmem>>, vector<1x8x128xf32>,
    } else {
    }
    return
  }
  func.func @transform_0(%arg0: i32, %arg1: i32) -> (i32, i32) {
    %c0_i32 = arith.constant 0 : i32
    return %arg0, %arg1 : i32, i32
  }
  func.func @transform_1(%arg0: i32, %arg1: i32) -> (i32, i32) {
    %c0_i32 = arith.constant 0 : i32
    %c0_i32_0 = arith.constant 0 : i32
    return %arg1, %c0_i32 : i32, i32
  }
  func.func @transform_2(%arg0: i32, %arg1: i32) -> (i32, i32) {
    %c0_i32 = arith.constant 0 : i32
    %c0_i32_0 = arith.constant 0 : i32
    return %arg0, %c0_i32 : i32, i32
  }
  func.func @transform_3(%arg0: i32, %arg1: i32) -> (i32, i32, i32) {
    %c0_i32 = arith.constant 0 : i32
    %c0_i32_0 = arith.constant 0 : i32
    %c0_i32_1 = arith.constant 0 : i32
    return %arg0, %c0_i32, %c0_i32_0 : i32, i32, i32
  }
}

module attributes {stable_mosaic.version = 11 : i64} {
  func.func @bn_relu_kernel(%arg0: i32, %arg1: memref<128x128xf32, #tpu.memory_space<vmem>>, %arg2: memref<1x128xf32, #tpu.memory_space<vmem>>, %arg3: memref<1x128xf32, #tpu.memory_space<vmem>>, %arg4: memref<128x128xf32, #tpu.memory_space<vmem>>) attributes {dimension_semantics = [#tpu.dimension_semantics<parallel>], iteration_bounds = array<i64: 1>, scalar_prefetch = 0 : i64, scratch_operands = 0 : i64, tpu.core_type = #tpu.core_type<tc>, window_params = [{transform_indices = @transform_0, window_bounds = array<i64: 128, 128>}, {pipeline_mode = #tpu.pipeline_mode<synchronous>, transform_indices = @transform_1, window_bounds = array<i64: 1, 128>}, {pipeline_mode = #tpu.pipeline_mode<synchronous>, transform_indices = @transform_2, window_bounds = array<i64: 1, 128>}, {transform_indices = @transform_3, window_bounds = array<i64: 128, 128>}]} {
    %c0 = arith.constant 0 : index
    %c0_0 = arith.constant 0 : index
    %0 = vector.load %arg1[%c0, %c0_0] : memref<128x128xf32, #tpu.memory_space<vmem>>, vector<128x128xf32>
    %c0_1 = arith.constant 0 : index
    %c0_2 = arith.constant 0 : index
    %1 = vector.load %arg2[%c0_1, %c0_2] : memref<1x128xf32, #tpu.memory_space<vmem>>, vector<1x128xf32>
    %2 = vector.broadcast %1 : vector<1x128xf32> to vector<128x128xf32>
    %3 = arith.mulf %0, %2 : vector<128x128xf32>
    %c0_3 = arith.constant 0 : index
    %c0_4 = arith.constant 0 : index
    %4 = vector.load %arg3[%c0_3, %c0_4] : memref<1x128xf32, #tpu.memory_space<vmem>>, vector<1x128xf32>
    %5 = vector.broadcast %4 : vector<1x128xf32> to vector<128x128xf32>
    %6 = arith.addf %3, %5 : vector<128x128xf32>
    %cst = arith.constant 0.000000e+00 : f32
    %7 = vector.broadcast %cst : f32 to vector<128x128xf32>
    %8 = arith.maximumf %6, %7 : vector<128x128xf32>
    %c0_5 = arith.constant 0 : index
    %c0_6 = arith.constant 0 : index
    %9 = vector.load %arg4[%c0_5, %c0_6] : memref<128x128xf32, #tpu.memory_space<vmem>>, vector<128x128xf32>
    tpu.vector_store %arg4[%c0_5, %c0_6], %8 {strides = array<i32>} : memref<128x128xf32, #tpu.memory_space<vmem>>, vector<128x128xf32>,
    return
  }
  func.func @transform_0(%arg0: i32) -> (i32, i32) {
    %c0_i32 = arith.constant 0 : i32
    %c0_i32_0 = arith.constant 0 : i32
    return %arg0, %c0_i32 : i32, i32
  }
  func.func @transform_1(%arg0: i32) -> (i32, i32) {
    %c0_i32 = arith.constant 0 : i32
    %c0_i32_0 = arith.constant 0 : i32
    %c0_i32_1 = arith.constant 0 : i32
    return %c0_i32, %c0_i32_0 : i32, i32
  }
  func.func @transform_2(%arg0: i32) -> (i32, i32) {
    %c0_i32 = arith.constant 0 : i32
    %c0_i32_0 = arith.constant 0 : i32
    %c0_i32_1 = arith.constant 0 : i32
    return %c0_i32, %c0_i32_0 : i32, i32
  }
  func.func @transform_3(%arg0: i32) -> (i32, i32) {
    %c0_i32 = arith.constant 0 : i32
    %c0_i32_0 = arith.constant 0 : i32
    return %arg0, %c0_i32 : i32, i32
  }
}

</mosaic_0001>

<bundles_post_ra>
// kernel: down_forward.5
= control target key start
LH: loop header
LB: loop body
LE: loop exit
PB: predicated region body
PF: predicated region fallthrough
CT: control target
= control target key end

     0   :  { %vm22_vm0 = vcmask 261120   ;;  %s69_s0 = inlined_call_operand.vmem [shape: f32[4,16,32], index: 0, kind: input, shape index: {}]   ;;  %s70_s1 = inlined_call_operand.vmem [shape: f32[16,32], index: 1, kind: output, shape index: {}]  }
   0x1   :  { %v8_v0 = vld [vmem:[%s69_s0] sm:$0xff]  ;;  %v10_v1 = vld [vmem:[%s69_s0 + $0x10] sm:$0xff]  ;;  %v9_v5 = vld [vmem:[%s69_s0 + $0x8] sm:$0xff] }
   0x2   :  { %v12_v2 = vld [vmem:[%s69_s0 + $0x20] sm:$0xff]  ;;  %v14_v3 = vld [vmem:[%s69_s0 + $0x30] sm:$0xff]  ;;  %v16_v4 = vmax.f32 %v8_v0, %v10_v1  ;;  %v11_v6 = vld [vmem:[%s69_s0 + $0x18] sm:$0xff] }
   0x3   :  { %v18_v7 = vmax.f32 %v12_v2, %v14_v3  ;;  %v13_v8 = vld [vmem:[%s69_s0 + $0x28] sm:$0xff]  ;;  %v15_v9 = vld [vmem:[%s69_s0 + $0x38] sm:$0xff]  ;;  %v17_v10 = vmax.f32 %v9_v5, %v11_v6 }
   0x4   :  { %v19_v11 = vmax.f32 %v13_v8, %v15_v9 }
   0x5   :  { %v20_v12 = vmax.f32 %v16_v4, %v18_v7 }
   0x6   :  { %v21_v13 = vmax.f32 %v17_v10, %v19_v11 }
   0x7   :  { %23 = vst.msk [vmem:[%s70_s1] sm:$0xff] %vm22_vm0, %v20_v12 }
   0x8   :  { %24 = vst.msk [vmem:[%s70_s1 + $0x8] sm:$0xff] %vm22_vm0, %v21_v13 }

// kernel: down_forward.7
= control target key start
LH: loop header
LB: loop body
LE: loop exit
PB: predicated region body
PF: predicated region fallthrough
CT: control target
= control target key end

     0   :  { %s254_s0 = inlined_call_operand.vmem [shape: f32[128,128], index: 0, kind: input, shape index: {}]   ;;  %s255_s1 = inlined_call_operand.vmem [shape: f32[1,128], index: 1, kind: input, shape index: {}]   ;;  %s256_s2 = inlined_call_operand.vmem [shape: f32[1,128], index: 2, kind: input, shape index: {}]   ;;  %s257_s3 = inlined_call_operand.vmem [shape: f32[128,128], index: 3, kind: output, shape index: {}]  }
   0x1   :  { %v14_v0 = vld [vmem:[%s254_s0] sm:$0xff]  ;;  %v15_v4 = vld [vmem:[%s254_s0 + $0x8] sm:$0xff]  ;;  %v16_v5 = vld [vmem:[%s254_s0 + $0x10] sm:$0xff] }
   0x2   :  { %v112_v1 = vld [vmem:[%s255_s1] ss:$0 sm:$0xff]  ;;  %v17_v6 = vld [vmem:[%s254_s0 + $0x18] sm:$0xff]  ;;  %v19_v11 = vld [vmem:[%s254_s0 + $0x28] sm:$0xff] }
   0x3   :  { %v143_v2 = vld [vmem:[%s256_s2] ss:$0 sm:$0xff]  ;;  %v37_v3 = vmul.f32 %v112_v1, %v14_v0  ;;  %v38_v7 = vmul.f32 %v112_v1, %v15_v4  ;;  %v39_v8 = vmul.f32 %v112_v1, %v16_v5  ;;  %v40_v9 = vmul.f32 %v112_v1, %v17_v6  ;;  %v20_v12 = vld [vmem:[%s254_s0 + $0x30] sm:$0xff]  ;;  %v21_v17 = vld [vmem:[%s254_s0 + $0x38] sm:$0xff] }
   0x4   :  { %v18_v10 = vld [vmem:[%s254_s0 + $0x20] sm:$0xff]  ;;  %v42_v15 = vmul.f32 %v112_v1, %v19_v11  ;;  %v43_v16 = vmul.f32 %v112_v1, %v20_v12  ;;  %v44_v21 = vmul.f32 %v112_v1, %v21_v17  ;;  %v23_v27 = vld [vmem:[%s254_s0 + $0x48] sm:$0xff]  ;;  %v24_v28 = vld [vmem:[%s254_s0 + $0x50] sm:$0xff] }
   0x5   :  { %v60_v13 = vadd.f32 %v143_v2, %v37_v3  ;;  %v41_v14 = vmul.f32 %v112_v1, %v18_v10  ;;  %v61_v18 = vadd.f32 %v143_v2, %v38_v7  ;;  %v62_v19 = vadd.f32 %v143_v2, %v39_v8  ;;  %v22_v22 = vld [vmem:[%s254_s0 + $0x40] sm:$0xff]  ;;  %v25_v29 = vld [vmem:[%s254_s0 + $0x58] sm:$0xff]  ;;  %v27_v35 = vld [vmem:[%s254_s0 + $0x68] sm:$0xff] }
   0x6   :  { %v63_v20 = vadd.f32 %v143_v2, %v40_v9  ;;  %v65_v25 = vadd.f32 %v143_v2, %v42_v15  ;;  %v66_v26 = vadd.f32 %v143_v2, %v43_v16  ;;  %v67_v33 = vadd.f32 %v143_v2, %v44_v21  ;;  %v26_v34 = vld [vmem:[%s254_s0 + $0x60] sm:$0xff]  ;;  %v28_v36 = vld [vmem:[%s254_s0 + $0x70] sm:$0xff]  ;;  %v29_v41 = vld [vmem:[%s254_s0 + $0x78] sm:$0xff] }
   0x7   :  { %v76_v23 = vmax.f32 %v60_v13, 0.0  ;;  %v64_v24 = vadd.f32 %v143_v2, %v41_v14  ;;  %v77_v30 = vmax.f32 %v61_v18, 0.0  ;;  %v78_v31 = vmax.f32 %v62_v19, 0.0 }
   0x8   :  { %v79_v32 = vmax.f32 %v63_v20, 0.0  ;;  %v81_v38 = vmax.f32 %v65_v25, 0.0  ;;  %v82_v39 = vmax.f32 %v66_v26, 0.0  ;;  %v45_v40 = vmul.f32 %v112_v1, %v22_v22 }
   0x9   :  { %92 = vst [vmem:[%s257_s3] sm:$0xff] %v76_v23  ;;  %v80_v37 = vmax.f32 %v64_v24, 0.0  ;;  %93 = vst [vmem:[%s257_s3 + $0x8] sm:$0xff] %v77_v30  ;;  %v83_v42 = vmax.f32 %v67_v33, 0.0  ;;  %v46_v43 = vmul.f32 %v112_v1, %v23_v27  ;;  %v47_v44 = vmul.f32 %v112_v1, %v24_v28 }
   0xa   :  { %94 = vst [vmem:[%s257_s3 + $0x10] sm:$0xff] %v78_v31  ;;  %95 = vst [vmem:[%s257_s3 + $0x18] sm:$0xff] %v79_v32  ;;  %v48_v45 = vmul.f32 %v112_v1, %v25_v29  ;;  %v68_v46 = vadd.f32 %v143_v2, %v45_v40  ;;  %v49_v47 = vmul.f32 %v112_v1, %v26_v34 }
   0xb   :  { %96 = vst [vmem:[%s257_s3 + $0x20] sm:$0xff] %v80_v37  ;;  %97 = vst [vmem:[%s257_s3 + $0x28] sm:$0xff] %v81_v38  ;;  %v50_v48 = vmul.f32 %v112_v1, %v27_v35  ;;  %v51_v49 = vmul.f32 %v112_v1, %v28_v36  ;;  %v69_v50 = vadd.f32 %v143_v2, %v46_v43 }
   0xc   :  { %98 = vst [vmem:[%s257_s3 + $0x30] sm:$0xff] %v82_v39  ;;  %99 = vst [vmem:[%s257_s3 + $0x38] sm:$0xff] %v83_v42  ;;  %v70_v51 = vadd.f32 %v143_v2, %v47_v44  ;;  %v71_v52 = vadd.f32 %v143_v2, %v48_v45  ;;  %v52_v53 = vmul.f32 %v112_v1, %v29_v41  ;;  %v84_v54 = vmax.f32 %v68_v46, 0.0 }
   0xd   :  { %v72_v55 = vadd.f32 %v143_v2, %v49_v47  ;;  %v73_v56 = vadd.f32 %v143_v2, %v50_v48  ;;  %v74_v57 = vadd.f32 %v143_v2, %v51_v49  ;;  %v85_v58 = vmax.f32 %v69_v50, 0.0 }
   0xe   :  { %v86_v59 = vmax.f32 %v70_v51, 0.0  ;;  %v87_v60 = vmax.f32 %v71_v52, 0.0  ;;  %v75_v61 = vadd.f32 %v143_v2, %v52_v53  ;;  %100 = vst [vmem:[%s257_s3 + $0x40] sm:$0xff] %v84_v54 }
   0xf   :  { %v88_v62 = vmax.f32 %v72_v55, 0.0  ;;  %v89_v63 = vmax.f32 %v73_v56, 0.0  ;;  %v90_v0 = vmax.f32 %v74_v57, 0.0  ;;  %101 = vst [vmem:[%s257_s3 + $0x48] sm:$0xff] %v85_v58 }
  0x10   :  { %102 = vst [vmem:[%s257_s3 + $0x50] sm:$0xff] %v86_v59  ;;  %103 = vst [vmem:[%s257_s3 + $0x58] sm:$0xff] %v87_v60  ;;  %v91_v1 = vmax.f32 %v75_v61, 0.0 }
  0x11   :  { %104 = vst [vmem:[%s257_s3 + $0x60] sm:$0xff] %v88_v62  ;;  %105 = vst [vmem:[%s257_s3 + $0x68] sm:$0xff] %v89_v63 }
  0x12   :  { %106 = vst [vmem:[%s257_s3 + $0x70] sm:$0xff] %v90_v0  ;;  %107 = vst [vmem:[%s257_s3 + $0x78] sm:$0xff] %v91_v1 }

// kernel: down_forward.6
= control target key start
LH: loop header
LB: loop body
LE: loop exit
PB: predicated region body
PF: predicated region fallthrough
CT: control target
= control target key end

     0   :  { %vm351_vm0 = vcmask 1040384   ;;  %vm353_vm1 = vcmask 1041408   ;;  %s651_s1 = inlined_call_operand.vmem [shape: f32[128,128], index: 1, kind: input, shape index: {}]   ;;  %s652_s0 = inlined_call_operand.vmem [shape: f32[128,128], index: 0, kind: input, shape index: {}]   ;;  %s653_s2 = inlined_call_operand.vmem [shape: f32[128,128], index: 2, kind: output, shape index: {0}]   ;;  %s654_s3 = inlined_call_operand.vmem [shape: f32[1,8,128], index: 3, kind: output, shape index: {1}]  }
   0x1   :  { %v80_v0 = vld [vmem:[%s651_s1 + $0x78] sm:$0xff]  ;;  %v79_v1 = vld [vmem:[%s651_s1 + $0x70] sm:$0xff]  ;;  %v78_v2 = vld [vmem:[%s651_s1 + $0x68] sm:$0xff] }
   0x2   :  { %396 = vmatprep.subr.mxu0 %v80_v0  ;;  %452 = vmatprep.subr.mxu1 %v80_v0  ;;  %v77_v3 = vld [vmem:[%s651_s1 + $0x60] sm:$0xff]  ;;  %v76_v4 = vld [vmem:[%s651_s1 + $0x58] sm:$0xff]  ;;  %v75_v5 = vld [vmem:[%s651_s1 + $0x50] sm:$0xff] }
   0x3   :  { %397 = vmatpush3.msra.mxu0 %v80_v0  ;;  %468 = vmatpush3.msra.mxu1 %v80_v0  ;;  %v74_v6 = vld [vmem:[%s651_s1 + $0x48] sm:$0xff]  ;;  %v73_v7 = vld [vmem:[%s651_s1 + $0x40] sm:$0xff]  ;;  %v72_v8 = vld [vmem:[%s651_s1 + $0x38] sm:$0xff] }
   0x4   :  { %398 = vmatprep.subr.mxu0 %v79_v1  ;;  %453 = vmatprep.subr.mxu1 %v79_v1  ;;  %v71_v9 = vld [vmem:[%s651_s1 + $0x30] sm:$0xff]  ;;  %v49_v10 = vld [vmem:[%s652_s0] sm:$0xff]  ;;  %v70_v11 = vld [vmem:[%s651_s1 + $0x28] sm:$0xff] }
   0x5   :  { %399 = vmatpush3.msra.mxu0 %v79_v1  ;;  %469 = vmatpush3.msra.mxu1 %v79_v1  ;;  %v69_v12 = vld [vmem:[%s651_s1 + $0x20] sm:$0xff]  ;;  %v68_v13 = vld [vmem:[%s651_s1 + $0x18] sm:$0xff]  ;;  %v67_v14 = vld [vmem:[%s651_s1 + $0x10] sm:$0xff] }
   0x6   :  { %400 = vmatprep.subr.mxu0 %v78_v2  ;;  %454 = vmatprep.subr.mxu1 %v78_v2  ;;  %v66_v15 = vld [vmem:[%s651_s1 + $0x8] sm:$0xff]  ;;  %v65_v16 = vld [vmem:[%s651_s1] sm:$0xff]  ;;  %v51_v18 = vld [vmem:[%s652_s0 + $0x10] sm:$0xff] }
   0x7   :  { %401 = vmatpush3.msra.mxu0 %v78_v2  ;;  %470 = vmatpush3.msra.mxu1 %v78_v2  ;;  %v50_v17 = vld [vmem:[%s652_s0 + $0x8] sm:$0xff]  ;;  %v57_v19 = vld [vmem:[%s652_s0 + $0x40] sm:$0xff]  ;;  %v59_v21 = vld [vmem:[%s652_s0 + $0x50] sm:$0xff] }
   0x8   :  { %402 = vmatprep.subr.mxu0 %v77_v3  ;;  %455 = vmatprep.subr.mxu1 %v77_v3  ;;  %v58_v20 = vld [vmem:[%s652_s0 + $0x48] sm:$0xff]  ;;  %v52_v22 = vld [vmem:[%s652_s0 + $0x18] sm:$0xff]  ;;  %v53_v23 = vld [vmem:[%s652_s0 + $0x20] sm:$0xff] }
   0x9   :  { %403 = vmatpush3.msra.mxu0 %v77_v3  ;;  %471 = vmatpush3.msra.mxu1 %v77_v3  ;;  %v60_v24 = vld [vmem:[%s652_s0 + $0x58] sm:$0xff]  ;;  %v61_v25 = vld [vmem:[%s652_s0 + $0x60] sm:$0xff]  ;;  %v54_v26 = vld [vmem:[%s652_s0 + $0x28] sm:$0xff] }
   0xa   :  { %404 = vmatprep.subr.mxu0 %v76_v4  ;;  %456 = vmatprep.subr.mxu1 %v76_v4  ;;  %v55_v27 = vld [vmem:[%s652_s0 + $0x30] sm:$0xff]  ;;  %v62_v28 = vld [vmem:[%s652_s0 + $0x68] sm:$0xff]  ;;  %v56_v30 = vld [vmem:[%s652_s0 + $0x38] sm:$0xff] }
   0xb   :  { %405 = vmatpush3.msra.mxu0 %v76_v4  ;;  %472 = vmatpush3.msra.mxu1 %v76_v4  ;;  %v63_v29 = vld [vmem:[%s652_s0 + $0x70] sm:$0xff]  ;;  %v64_v31 = vld [vmem:[%s652_s0 + $0x78] sm:$0xff] }
   0xc   :  { %406 = vmatprep.subr.mxu0 %v75_v5  ;;  %457 = vmatprep.subr.mxu1 %v75_v5 }
   0xd   :  { %407 = vmatpush3.msra.mxu0 %v75_v5  ;;  %473 = vmatpush3.msra.mxu1 %v75_v5 }
   0xe   :  { %408 = vmatprep.subr.mxu0 %v74_v6  ;;  %458 = vmatprep.subr.mxu1 %v74_v6 }
   0xf   :  { %409 = vmatpush3.msra.mxu0 %v74_v6  ;;  %474 = vmatpush3.msra.mxu1 %v74_v6 }
  0x10   :  { %410 = vmatprep.subr.mxu0 %v73_v7  ;;  %459 = vmatprep.subr.mxu1 %v73_v7 }
  0x11   :  { %411 = vmatpush3.msra.mxu0 %v73_v7  ;;  %475 = vmatpush3.msra.mxu1 %v73_v7 }
  0x12   :  { %412 = vmatprep.subr.mxu0 %v72_v8  ;;  %460 = vmatprep.subr.mxu1 %v72_v8 }
  0x13   :  { %413 = vmatpush3.msra.mxu0 %v72_v8  ;;  %476 = vmatpush3.msra.mxu1 %v72_v8 }
  0x14   :  { %414 = vmatprep.subr.mxu0 %v71_v9  ;;  %428 = vmatprep.mubr.f32.mxu0 %v49_v10 }
  0x15   :  { %415 = vmatpush3.msra.mxu0 %v71_v9  ;;  %461 = vmatprep.subr.mxu1 %v71_v9 }
  0x16   :  { %416 = vmatprep.subr.mxu0 %v70_v11  ;;  %477 = vmatpush3.msra.mxu1 %v71_v9 }
  0x17   :  { %417 = vmatpush3.msra.mxu0 %v70_v11  ;;  %462 = vmatprep.subr.mxu1 %v70_v11 }
  0x18   :  { %418 = vmatprep.subr.mxu0 %v69_v12  ;;  %478 = vmatpush3.msra.mxu1 %v70_v11 }
  0x19   :  { %419 = vmatpush3.msra.mxu0 %v69_v12  ;;  %463 = vmatprep.subr.mxu1 %v69_v12 }
  0x1a   :  { %420 = vmatprep.subr.mxu0 %v68_v13  ;;  %479 = vmatpush3.msra.mxu1 %v69_v12 }
  0x1b   :  { %421 = vmatpush3.msra.mxu0 %v68_v13  ;;  %464 = vmatprep.subr.mxu1 %v68_v13 }
  0x1c   :  { %422 = vmatprep.subr.mxu0 %v67_v14  ;;  %480 = vmatpush3.msra.mxu1 %v68_v13 }
  0x1d   :  { %423 = vmatpush3.msra.mxu0 %v67_v14  ;;  %465 = vmatprep.subr.mxu1 %v67_v14 }
  0x1e   :  { %424 = vmatprep.subr.mxu0 %v66_v15  ;;  %481 = vmatpush3.msra.mxu1 %v67_v14 }
  0x1f   :  { %425 = vmatpush3.msra.mxu0 %v66_v15  ;;  %466 = vmatprep.subr.mxu1 %v66_v15 }
  0x20   :  { %426 = vmatprep.subr.mxu0 %v65_v16  ;;  %482 = vmatpush3.msra.mxu1 %v66_v15 }
  0x21   :  { %427 = vmatpush3.msra.mxu0 %v65_v16  ;;  %467 = vmatprep.subr.mxu1 %v65_v16 }
  0x22   :  { %429 = vmatmul.mubr.f32.vlgmr.msra.gmra.mxu0 %v50_v17  ;;  %483 = vmatpush3.msra.mxu1 %v65_v16 }
  0x23   :  { %431 = vmatprep.mubr.f32.mxu0 %v51_v18  ;;  %440 = vmatprep.mubr.f32.mxu1 %v57_v19 }
  0x24   :  { %441 = vmatmul.mubr.f32.vlgmr.msra.gmra.mxu1 %v58_v20 }
  0x25   :  { %443 = vmatprep.mubr.f32.mxu1 %v59_v21 }
  0x26   :  { %432 = vmatmul.mubr.f32.gmra.mxu0 %v52_v22 }
  0x27   :  { %434 = vmatprep.mubr.f32.mxu0 %v53_v23 }
  0x28   :  { %444 = vmatmul.mubr.f32.gmra.mxu1 %v60_v24 }
  0x29   :  { %446 = vmatprep.mubr.f32.mxu1 %v61_v25 }
  0x2a   :  { %435 = vmatmul.mubr.f32.gmra.mxu0 %v54_v26 }
  0x2b   :  { %437 = vmatprep.mubr.f32.mxu0 %v55_v27 }
  0x2c   :  { %447 = vmatmul.mubr.f32.gmra.mxu1 %v62_v28 }
  0x2d   :  { %449 = vmatprep.mubr.f32.mxu1 %v63_v29 }
  0x2e   :  { %438 = vmatmul.mubr.f32.gmra.mxu0 %v56_v30 }
  0x30   :  { %450 = vmatmul.mubr.f32.gmra.mxu1 %v64_v31 }
  0xe2   :  { %v430_v32 = vpop.f32.mrf.mxu0 }
  0xe3   :  { %278 = vst [vmem:[%s653_s2 + $0x8] sm:$0xff] %v430_v32  ;;  %v315_v38 = vmul.f32 %v430_v32, %v430_v32 }
  0xe4   :  { %v147_v33 = vpop.f32.mrf.mxu0  ;;  %v442_v34 = vpop.f32.mrf.mxu1 }
  0xe5   :  { %277 = vst [vmem:[%s653_s2] sm:$0xff] %v147_v33  ;;  %v314_v35 = vmul.f32 %v147_v33, %v147_v33  ;;  %286 = vst [vmem:[%s653_s2 + $0x48] sm:$0xff] %v442_v34  ;;  %v293_v39 = vadd.f32 %v430_v32, %v147_v33  ;;  %v323_v8 = vmul.f32 %v442_v34, %v442_v34 }
  0xe6   :  { %v433_v36 = vpop.f32.mrf.mxu0  ;;  %v187_v37 = vpop.f32.mrf.mxu1 }
  0xe7   :  { %280 = vst [vmem:[%s653_s2 + $0x18] sm:$0xff] %v433_v36  ;;  %285 = vst [vmem:[%s653_s2 + $0x40] sm:$0xff] %v187_v37  ;;  %v330_v42 = vadd.f32 %v315_v38, %v314_v35  ;;  %v317_v47 = vmul.f32 %v433_v36, %v433_v36  ;;  %v322_v7 = vmul.f32 %v187_v37, %v187_v37 }
  0xe8   :  { %v157_v40 = vpop.f32.mrf.mxu0  ;;  %v445_v41 = vpop.f32.mrf.mxu1 }
  0xe9   :  { %279 = vst [vmem:[%s653_s2 + $0x10] sm:$0xff] %v157_v40  ;;  %v294_v43 = vadd.f32 %v293_v39, %v157_v40  ;;  %v316_v44 = vmul.f32 %v157_v40, %v157_v40  ;;  %288 = vst [vmem:[%s653_s2 + $0x58] sm:$0xff] %v445_v41  ;;  %v325_v14 = vmul.f32 %v445_v41, %v445_v41 }
  0xea   :  { %v436_v45 = vpop.f32.mrf.mxu0  ;;  %v197_v46 = vpop.f32.mrf.mxu1 }
  0xeb   :  { %v331_v48 = vadd.f32 %v330_v42, %v316_v44  ;;  %282 = vst [vmem:[%s653_s2 + $0x28] sm:$0xff] %v436_v45  ;;  %v295_v49 = vadd.f32 %v433_v36, %v294_v43  ;;  %287 = vst [vmem:[%s653_s2 + $0x50] sm:$0xff] %v197_v46  ;;  %v319_v57 = vmul.f32 %v436_v45, %v436_v45 }
  0xec   :  { %v167_v50 = vpop.f32.mrf.mxu0  ;;  %v448_v51 = vpop.f32.mrf.mxu1  ;;  %v324_v12 = vmul.f32 %v197_v46, %v197_v46 }
  0xed   :  { %281 = vst [vmem:[%s653_s2 + $0x20] sm:$0xff] %v167_v50  ;;  %v296_v52 = vadd.f32 %v295_v49, %v167_v50  ;;  %v318_v53 = vmul.f32 %v167_v50, %v167_v50  ;;  %v332_v54 = vadd.f32 %v331_v48, %v317_v47  ;;  %290 = vst [vmem:[%s653_s2 + $0x68] sm:$0xff] %v448_v51 }
  0xee   :  { %v439_v55 = vpop.f32.mrf.mxu0  ;;  %v207_v56 = vpop.f32.mrf.mxu1  ;;  %v327_v20 = vmul.f32 %v448_v51, %v448_v51 }
  0xef   :  { %v333_v58 = vadd.f32 %v332_v54, %v318_v53  ;;  %284 = vst [vmem:[%s653_s2 + $0x38] sm:$0xff] %v439_v55  ;;  %v297_v59 = vadd.f32 %v436_v45, %v296_v52  ;;  %289 = vst [vmem:[%s653_s2 + $0x60] sm:$0xff] %v207_v56  ;;  %v321_v2 = vmul.f32 %v439_v55, %v439_v55 }
  0xf0   :  { %v177_v60 = vpop.f32.mrf.mxu0  ;;  %v451_v61 = vpop.f32.mrf.mxu1  ;;  %v326_v18 = vmul.f32 %v207_v56, %v207_v56 }
  0xf1   :  { %283 = vst [vmem:[%s653_s2 + $0x30] sm:$0xff] %v177_v60  ;;  %v298_v62 = vadd.f32 %v297_v59, %v177_v60  ;;  %v320_v63 = vmul.f32 %v177_v60, %v177_v60  ;;  %v334_v0 = vadd.f32 %v333_v58, %v319_v57  ;;  %292 = vst [vmem:[%s653_s2 + $0x78] sm:$0xff] %v451_v61 }
  0xf2   :  { %v217_v1 = vpop.f32.mrf.mxu1  ;;  %v329_v26 = vmul.f32 %v451_v61, %v451_v61 }
  0xf3   :  { %v299_v3 = vadd.f32 %v439_v55, %v298_v62  ;;  %v335_v4 = vadd.f32 %v334_v0, %v320_v63  ;;  %291 = vst [vmem:[%s653_s2 + $0x70] sm:$0xff] %v217_v1  ;;  %v328_v24 = vmul.f32 %v217_v1, %v217_v1 }
  0xf5   :  { %v336_v5 = vadd.f32 %v335_v4, %v321_v2  ;;  %v300_v6 = vadd.f32 %v299_v3, %v187_v37 }
  0xf7   :  { %v337_v9 = vadd.f32 %v336_v5, %v322_v7  ;;  %v301_v10 = vadd.f32 %v442_v34, %v300_v6 }
  0xf9   :  { %v302_v11 = vadd.f32 %v301_v10, %v197_v46  ;;  %v338_v13 = vadd.f32 %v337_v9, %v323_v8 }
  0xfb   :  { %v339_v15 = vadd.f32 %v338_v13, %v324_v12  ;;  %v303_v16 = vadd.f32 %v445_v41, %v302_v11 }
  0xfd   :  { %v304_v17 = vadd.f32 %v303_v16, %v207_v56  ;;  %v340_v19 = vadd.f32 %v339_v15, %v325_v14 }
  0xff   :  { %v341_v21 = vadd.f32 %v340_v19, %v326_v18  ;;  %v305_v22 = vadd.f32 %v448_v51, %v304_v17 }
 0x101   :  { %v306_v23 = vadd.f32 %v305_v22, %v217_v1  ;;  %v342_v25 = vadd.f32 %v341_v21, %v327_v20 }
 0x103   :  { %v307_v27 = vadd.f32 %v451_v61, %v306_v23  ;;  %v343_v28 = vadd.f32 %v342_v25, %v328_v24 }
 0x105   :  { %v308_v29 = vrot.slane %v307_v27, 4  ;;  %v344_v30 = vadd.f32 %v343_v28, %v329_v26 }
 0x107   :  { %v309_v31 = vadd.f32 %v308_v29, %v307_v27  ;;  %v345_v32 = vrot.slane %v344_v30, 4 }
 0x109   :  { %v310_v33 = vrot.slane %v309_v31, 2  ;;  %v346_v34 = vadd.f32 %v345_v32, %v344_v30 }
 0x10b   :  { %v311_v35 = vadd.f32 %v310_v33, %v309_v31  ;;  %v347_v36 = vrot.slane %v346_v34, 2 }
 0x10d   :  { %v312_v37 = vrot.slane %v311_v35, 1  ;;  %v348_v38 = vadd.f32 %v347_v36, %v346_v34 }
 0x10f   :  { %v349_v39 = vrot.slane %v348_v38, 1  ;;  %v313_v40 = vadd.f32 %v312_v37, %v311_v35 }
 0x111   :  { %v350_v41 = vadd.f32 %v349_v39, %v348_v38 }
 0x113   :  { %v352_v42 = vsel %vm351_vm0, %v313_v40, %v350_v41 }
 0x114   :  { %v354_v43 = vsel %vm353_vm1, %v352_v42, 0.0 }
 0x115   :  { %355 = vst [vmem:[%s654_s3] sm:$0xff] %v354_v43 }

</bundles_post_ra>
